<compile_context>
chip_gen: v5e
topology: v5e:2x2
jax: 0.10.0
libtpu: 0.0.40
codegen_flags: <defaults>
</compile_context>

<pallas_src>
import functools
import math

import jax
import jax.numpy as jnp
from jax.experimental import pallas as pl
from jax.experimental.pallas import tpu as pltpu


_LANE = 128


def _round_up(n, m):
    return ((n + m - 1) // m) * m


def _vmem_budget_bytes():
    """Per-kernel scoped-VMEM limit, generation-aware with a safe fallback."""
    cap = 64 * 1024 * 1024  # conservative default (v7x per-core physical)
    try:
        get_info = getattr(pltpu, "get_tpu_info", None)
        if get_info is not None:
            cap = int(getattr(get_info(), "vmem_capacity_bytes", cap))
    except Exception:
        pass
    # Leave headroom for Mosaic internal scratch; cap the scoped limit.
    return max(32 * 1024 * 1024, min(cap - 16 * 1024 * 1024, 100 * 1024 * 1024))


def _erf_approx(x):
    # Abramowitz & Stegun 7.1.26 rational approximation, |error| <= 1.5e-7.
    # Built only from mul/add/exp/where so it lowers everywhere.
    a1 = jnp.float32(0.254829592)
    a2 = jnp.float32(-0.284496736)
    a3 = jnp.float32(1.421413741)
    a4 = jnp.float32(-1.453152027)
    a5 = jnp.float32(1.061405429)
    p = jnp.float32(0.3275911)
    ax = jnp.abs(x)
    t = 1.0 / (1.0 + p * ax)
    poly = ((((a5 * t + a4) * t + a3) * t + a2) * t + a1) * t
    y = 1.0 - poly * jnp.exp(-ax * ax)
    return jnp.where(x >= 0, y, -y)


def _gelu_exact(x):
    # PyTorch F.gelu default = exact erf-based GELU (approx error ~1e-7).
    return 0.5 * x * (1.0 + _erf_approx(x * jnp.float32(1.0 / math.sqrt(2.0))))


def _hash_uniform(shape, *, col_offset, cout_total, batch_id, seed_mixed):
    """Uniform [0,1) per element, keyed on global (batch,row,col) + layer seed.

    Counter-based (murmur3 fmix32) so the mask is independent of channel
    tiling; all index math is done in uint32 to avoid int32 wrap.
    """
    row = jax.lax.broadcasted_iota(jnp.int32, shape, 0).astype(jnp.uint32)
    col = (jax.lax.broadcasted_iota(jnp.int32, shape, 1) + col_offset).astype(jnp.uint32)
    idx = row * jnp.uint32(cout_total) + col
    h = idx ^ jnp.uint32(seed_mixed)
    h = h + (batch_id + 1).astype(jnp.uint32) * jnp.uint32(0x9E3779B1)
    h = h ^ (h >> 16)
    h = h * jnp.uint32(0x85EBCA6B)
    h = h ^ (h >> 13)
    h = h * jnp.uint32(0xC2B2AE35)
    h = h ^ (h >> 16)
    # top 23 bits -> [0,1); route through int32 so the int->float convert is signed.
    return (h >> 9).astype(jnp.int32).astype(jnp.float32) * jnp.float32(1.0 / (1 << 23))


def _conv_k3_kernel(*refs, has_bn, n_k, apply_dropout, dropout_p, seed_mixed,
                    cout_tile, cout_total):
    # refs (n_k == 1): x (L,tK) | w (3,tK,tC) | b (1,tC) | [scale, shift] | out (L-2,tC)
    # refs (n_k  > 1): same refs + trailing f32 accumulator scratch (L-2,tC)
    if n_k > 1:
        acc_ref = refs[-1]
        refs = refs[:-1]
    else:
        acc_ref = None
    if has_bn:
        x_ref, w_ref, b_ref, scale_ref, shift_ref, o_ref = refs
    else:
        x_ref, w_ref, b_ref, o_ref = refs
        scale_ref = shift_ref = None

    # program_id must be read at the kernel top level (NOT inside a pl.when
    # body) so the interpret/CPU fallback can lower it; values are captured.
    if apply_dropout:
        batch_id = pl.program_id(0)
        col_offset = pl.program_id(1) * cout_tile
    else:
        batch_id = col_offset = None

    lo = o_ref.shape[0]                  # L - 2
    x = x_ref[...]                       # (L, tK) bf16

    def finish(acc):
        # bias / BN / GELU / dropout, applied once per output tile.
        y = acc + b_ref[...]
        if has_bn:
            y = y * scale_ref[...] + shift_ref[...]
        y = _gelu_exact(y)
        if apply_dropout:
            u = _hash_uniform(y.shape, col_offset=col_offset,
                              cout_total=cout_total, batch_id=batch_id,
                              seed_mixed=seed_mixed)
            keep = u >= jnp.float32(dropout_p)
            y = jnp.where(keep, y * jnp.float32(1.0 / (1.0 - dropout_p)),
                          jnp.float32(0.0))
        o_ref[...] = y.astype(o_ref.dtype)

    # TODO(synk): if the bundle shows ld/st pressure from the sublane-shifted
    # bf16 slices below, switch to pltpu.roll or shift the f32 products.
    if n_k == 1:
        # Full-K fast path: no reduction axis, no scratch, no phases.
        acc = jnp.dot(x[0:lo, :], w_ref[0], preferred_element_type=jnp.float32)
        acc = acc + jnp.dot(x[1:lo + 1, :], w_ref[1], preferred_element_type=jnp.float32)
        acc = acc + jnp.dot(x[2:lo + 2, :], w_ref[2], preferred_element_type=jnp.float32)
        finish(acc)
    else:
        k_id = pl.program_id(2)

        @pl.when(k_id == 0)
        def _init():
            acc_ref[...] = jnp.zeros_like(acc_ref)

        # Chained accumulation: each MXU product drains before the next add.
        acc_ref[...] += jnp.dot(x[0:lo, :], w_ref[0], preferred_element_type=jnp.float32)
        acc_ref[...] += jnp.dot(x[1:lo + 1, :], w_ref[1], preferred_element_type=jnp.float32)
        acc_ref[...] += jnp.dot(x[2:lo + 2, :], w_ref[2], preferred_element_type=jnp.float32)

        @pl.when(k_id == n_k - 1)
        def _finalize():
            finish(acc_ref[...])


def conv1d_k3(x, w, b, bn_scale=None, bn_shift=None, *,
              dropout_p=0.0, apply_dropout=False, layer_seed=0,
              vmem_budget=None):
    """Fused valid Conv1d(k=3) [+ eval BatchNorm] + GELU [+ dropout], NLC in/out.

    Channel dims must already be multiples of 128 (the forward wrapper pads).
    """
    N, L, Cin = x.shape
    kw, wcin, Cout = w.shape
    assert kw == 3 and wcin == Cin
    assert Cin % _LANE == 0 and Cout % _LANE == 0
    L_out = L - 2
    assert L_out > 0, "sequence too short for a valid k=3 conv"

    if vmem_budget is None:
        vmem_budget = _vmem_budget_bytes()
    fit = int(vmem_budget) * 3 // 4      # headroom for Mosaic internal scratch

    def footprint(tk, tc, with_acc):
        xb = 2 * (L * tk * 2)                         # double-buffered bf16 x slab
        wb = 2 * (3 * tk * tc * 2)                    # double-buffered bf16 weights
        ob = 2 * (L_out * tc * x.dtype.itemsize)      # double-buffered output
        ab = (L_out * tc * 4) if with_acc else 0      # f32 accumulator scratch
        return xb + wb + ob + ab

    tc_cands = [c for c in (512, 256, 128) if Cout % c == 0] or [Cout]
    tk_cands = [c for c in (512, 256, 128) if Cin % c == 0] or [Cin]

    chosen = None
    # 1) Full-K (no reduction axis): activation read once per batch element.
    for tc in tc_cands:
        if footprint(Cin, tc, with_acc=False) <= fit:
            chosen = (Cin, tc)
            break
    # 2) K-tiled with an f32 accumulator scratch.
    if chosen is None:
        for tc in tc_cands:
            for tk in tk_cands:
                if footprint(tk, tc, with_acc=True) <= fit:
                    chosen = (tk, tc)
                    break
            if chosen is not None:
                break
    # 3) Last resort: smallest tiles (still correct, just tighter on VMEM).
    if chosen is None:
        chosen = (tk_cands[-1], tc_cands[-1])
    tK, tC = chosen
    n_k = Cin // tK
    n_j = Cout // tC

    has_bn = bn_scale is not None
    do_drop = bool(apply_dropout) and float(dropout_p) > 0.0
    seed_mixed = (int(layer_seed) * 0x9E3779B1) & 0xFFFFFFFF

    kernel = functools.partial(
        _conv_k3_kernel, has_bn=has_bn, n_k=n_k, apply_dropout=do_drop,
        dropout_p=float(dropout_p), seed_mixed=seed_mixed,
        cout_tile=tC, cout_total=Cout)

    if n_k == 1:
        grid = (N, n_j)
        x_spec = pl.BlockSpec((None, L, tK), lambda n, j: (n, 0, 0))
        w_spec = pl.BlockSpec((3, tK, tC), lambda n, j: (0, 0, j))
        v_spec = pl.BlockSpec((1, tC), lambda n, j: (0, j))
        o_spec = pl.BlockSpec((None, L_out, tC), lambda n, j: (n, 0, j))
        scratch = []
        semantics = ("parallel", "parallel")
    else:
        grid = (N, n_j, n_k)
        x_spec = pl.BlockSpec((None, L, tK), lambda n, j, k: (n, 0, k))
        w_spec = pl.BlockSpec((3, tK, tC), lambda n, j, k: (0, k, j))
        v_spec = pl.BlockSpec((1, tC), lambda n, j, k: (0, j))
        o_spec = pl.BlockSpec((None, L_out, tC), lambda n, j, k: (n, 0, j))
        scratch = [pltpu.VMEM((L_out, tC), jnp.float32)]
        semantics = ("parallel", "parallel", "arbitrary")

    in_specs = [x_spec, w_spec, v_spec]
    args = [x, w, b]
    if has_bn:
        in_specs += [v_spec, v_spec]
        args += [bn_scale, bn_shift]

    cost = pl.CostEstimate(
        flops=2 * 3 * N * L_out * Cin * Cout,
        transcendentals=N * L_out * Cout,   # one exp per GELU
        bytes_accessed=(x.size * x.dtype.itemsize + w.size * w.dtype.itemsize
                        + N * L_out * Cout * x.dtype.itemsize))

    return pl.pallas_call(
        kernel,
        out_shape=jax.ShapeDtypeStruct((N, L_out, Cout), x.dtype),
        grid=grid,
        in_specs=in_specs,
        out_specs=o_spec,
        scratch_shapes=scratch,
        compiler_params=pltpu.CompilerParams(
            dimension_semantics=semantics,
            vmem_limit_bytes=int(vmem_budget)),
        cost_estimate=cost,
    )(*args)


def _pad_last(a, new_size):
    pad = new_size - a.shape[-1]
    if pad <= 0:
        return a
    widths = [(0, 0)] * (a.ndim - 1) + [(0, pad)]
    return jnp.pad(a, widths)


def _pad_w(w, cin_new, cout_new):
    # w: (3, Cin, Cout) -> zero-pad both channel dims (exact no-op padding).
    pc = max(cin_new - w.shape[1], 0)
    po = max(cout_new - w.shape[2], 0)
    if pc == 0 and po == 0:
        return w
    return jnp.pad(w, ((0, 0), (0, pc), (0, po)))


def init_cnn1d10_params(key, n_mels, out_channels, hidden=2048):
    """Deterministic synthetic parameters.

    Conv weights are (k, Cin, Cout) bf16 (channels-last MXU layout); biases and
    folded BatchNorm scale/shift stay f32.
    """
    sizes = [n_mels] + [hidden] * 4 + [out_channels]
    eps = 1e-5
    params = []
    for cin, cout in zip(sizes[:-1], sizes[1:]):
        key, k0, k1, k2, k3, k4, k5 = jax.random.split(key, 7)
        bound1 = 1.0 / math.sqrt(cin * 3)
        bound2 = 1.0 / math.sqrt(cout * 3)
        w1 = jax.random.uniform(k0, (3, cin, cout), jnp.float32,
                                -bound1, bound1).astype(jnp.bfloat16)
        b1 = jax.random.uniform(k1, (1, cout), jnp.float32, -bound1, bound1)
        w2 = jax.random.uniform(k2, (3, cout, cout), jnp.float32,
                                -bound2, bound2).astype(jnp.bfloat16)
        b2 = jax.random.uniform(k3, (1, cout), jnp.float32, -bound2, bound2)
        gamma = jnp.ones((1, cout), jnp.float32)
        beta = jnp.zeros((1, cout), jnp.float32)
        running_mean = 0.1 * jax.random.normal(k4, (1, cout), jnp.float32)
        running_var = 0.5 + 0.5 * jnp.abs(jax.random.normal(k5, (1, cout), jnp.float32))
        bn_scale = gamma / jnp.sqrt(running_var + eps)
        bn_shift = beta - running_mean * bn_scale
        params.append((w1, b1, w2, b2, bn_scale, bn_shift))
    return params


def cnn1d10_forward(x_ncl, params, *, dropout_p=0.2, apply_dropout=True, seed=0):
    # External API is PyTorch NCL; kernels run channels-last (NLC) in bf16.
    out_dtype = x_ncl.dtype
    n_mels = x_ncl.shape[1]
    out_channels = params[-1][0].shape[2]

    x = jnp.transpose(x_ncl, (0, 2, 1)).astype(jnp.bfloat16)     # (N, L, C)
    # Lane-align the channel axis (zero padding is exact: zero weights in,
    # zero activations out), sliced off at the end.
    x = _pad_last(x, _round_up(n_mels, _LANE))

    vmem_budget = _vmem_budget_bytes()
    for i, (w1, b1, w2, b2, bn_scale, bn_shift) in enumerate(params):
        cin_p = x.shape[-1]
        c1_p = _round_up(w1.shape[2], _LANE)
        c2_p = _round_up(w2.shape[2], _LANE)
        w1p = _pad_w(w1, cin_p, c1_p)
        b1p = _pad_last(b1, c1_p)
        w2p = _pad_w(w2, c1_p, c2_p)
        b2p = _pad_last(b2, c2_p)
        scale_p = _pad_last(bn_scale, c2_p)
        shift_p = _pad_last(bn_shift, c2_p)

        # conv1 + GELU
        x = conv1d_k3(x, w1p, b1p, vmem_budget=vmem_budget)
        # conv2 + BN(eval) + GELU + dropout (F.dropout default: training=True)
        x = conv1d_k3(x, w2p, b2p, scale_p, shift_p,
                      dropout_p=dropout_p, apply_dropout=apply_dropout,
                      layer_seed=seed * 1000003 + i * 7919 + 0x5BD1,
                      vmem_budget=vmem_budget)

    x = x[..., :out_channels]                                     # drop pad
    return jnp.transpose(x, (0, 2, 1)).astype(out_dtype)


if __name__ == "__main__":
    key = jax.random.PRNGKey(0)
    k_params, k_x = jax.random.split(key)

    # Small test shapes (real module uses hidden=2048; same code path).
    n_mels = 8
    hidden = 32
    out_channels = 16
    batch = 2
    length = 40  # each of the 5 blocks shrinks length by 4 -> final length 20

    params = init_cnn1d10_params(k_params, n_mels, out_channels, hidden=hidden)
    x = jax.random.normal(k_x, (batch, n_mels, length), jnp.float32)

    y = cnn1d10_forward(x, params, dropout_p=0.2, apply_dropout=True, seed=0)
    y = jax.block_until_ready(y)

    expected_shape = (batch, out_channels, length - 4 * len(params))
    assert y.shape == expected_shape, (y.shape, expected_shape)
    assert bool(jnp.all(jnp.isfinite(y)))
    print("KERNEL_OK")
</pallas_src>

<mosaic_0001>
module attributes {stable_mosaic.version = 11 : i64} {
  func.func @_conv_k3_kernel(%arg0: i32, %arg1: i32, %arg2: memref<1x40x128xbf16, #tpu.memory_space<vmem>>, %arg3: memref<3x128x128xbf16, #tpu.memory_space<vmem>>, %arg4: memref<1x128xf32, #tpu.memory_space<vmem>>, %arg5: memref<1x38x128xbf16, #tpu.memory_space<vmem>>) attributes {dimension_semantics = [#tpu.dimension_semantics<parallel>, #tpu.dimension_semantics<parallel>], iteration_bounds = array<i64: 2, 1>, scalar_prefetch = 0 : i64, scratch_operands = 0 : i64, tpu.core_type = #tpu.core_type<tc>, window_params = [{transform_indices = @transform_0, window_bounds = array<i64: 1, 40, 128>}, {transform_indices = @transform_1, window_bounds = array<i64: 3, 128, 128>}, {transform_indices = @transform_2, window_bounds = array<i64: 1, 128>}, {transform_indices = @transform_3, window_bounds = array<i64: 1, 38, 128>}]} {
    %c0 = arith.constant 0 : index
    %c0_0 = arith.constant 0 : index
    %c0_1 = arith.constant 0 : index
    %0 = vector.load %arg2[%c0, %c0_0, %c0_1] : memref<1x40x128xbf16, #tpu.memory_space<vmem>>, vector<1x40x128xbf16>
    %1 = vector.shape_cast %0 : vector<1x40x128xbf16> to vector<40x128xbf16>
    %2 = vector.extract_strided_slice %1 {offsets = [0, 0], sizes = [38, 128], strides = [1, 1]} : vector<40x128xbf16> to vector<38x128xbf16>
    %c0_2 = arith.constant 0 : index
    %c0_3 = arith.constant 0 : index
    %c0_4 = arith.constant 0 : index
    %3 = vector.load %arg3[%c0_2, %c0_3, %c0_4] : memref<3x128x128xbf16, #tpu.memory_space<vmem>>, vector<1x128x128xbf16>
    %4 = vector.shape_cast %3 : vector<1x128x128xbf16> to vector<128x128xbf16>
    %cst = arith.constant dense<0.000000e+00> : vector<38x128xf32>
    %5 = tpu.matmul %2, %4, %cst {dimension_numbers = #tpu.dot_dimension_numbers<[1], [0], [0], [1], [0, 0, 1, 1], [], []>} : vector<38x128xbf16>, vector<128x128xbf16>, vector<38x128xf32> -> vector<38x128xf32>
    %6 = vector.extract_strided_slice %1 {offsets = [1, 0], sizes = [38, 128], strides = [1, 1]} : vector<40x128xbf16> to vector<38x128xbf16>
    %c1 = arith.constant 1 : index
    %c0_5 = arith.constant 0 : index
    %c0_6 = arith.constant 0 : index
    %7 = vector.load %arg3[%c1, %c0_5, %c0_6] : memref<3x128x128xbf16, #tpu.memory_space<vmem>>, vector<1x128x128xbf16>
    %8 = vector.shape_cast %7 : vector<1x128x128xbf16> to vector<128x128xbf16>
    %cst_7 = arith.constant dense<0.000000e+00> : vector<38x128xf32>
    %9 = tpu.matmul %6, %8, %cst_7 {dimension_numbers = #tpu.dot_dimension_numbers<[1], [0], [0], [1], [0, 0, 1, 1], [], []>} : vector<38x128xbf16>, vector<128x128xbf16>, vector<38x128xf32> -> vector<38x128xf32>
    %10 = arith.addf %5, %9 : vector<38x128xf32>
    %11 = vector.extract_strided_slice %1 {offsets = [2, 0], sizes = [38, 128], strides = [1, 1]} : vector<40x128xbf16> to vector<38x128xbf16>
    %c2 = arith.constant 2 : index
    %c0_8 = arith.constant 0 : index
    %c0_9 = arith.constant 0 : index
    %12 = vector.load %arg3[%c2, %c0_8, %c0_9] : memref<3x128x128xbf16, #tpu.memory_space<vmem>>, vector<1x128x128xbf16>
    %13 = vector.shape_cast %12 : vector<1x128x128xbf16> to vector<128x128xbf16>
    %cst_10 = arith.constant dense<0.000000e+00> : vector<38x128xf32>
    %14 = tpu.matmul %11, %13, %cst_10 {dimension_numbers = #tpu.dot_dimension_numbers<[1], [0], [0], [1], [0, 0, 1, 1], [], []>} : vector<38x128xbf16>, vector<128x128xbf16>, vector<38x128xf32> -> vector<38x128xf32>
    %15 = arith.addf %10, %14 : vector<38x128xf32>
    %c0_11 = arith.constant 0 : index
    %c0_12 = arith.constant 0 : index
    %16 = vector.load %arg4[%c0_11, %c0_12] : memref<1x128xf32, #tpu.memory_space<vmem>>, vector<1x128xf32>
    %17 = vector.broadcast %16 : vector<1x128xf32> to vector<38x128xf32>
    %18 = arith.addf %15, %17 : vector<38x128xf32>
    %cst_13 = arith.constant 5.000000e-01 : f32
    %19 = vector.broadcast %cst_13 : f32 to vector<38x128xf32>
    %20 = arith.mulf %19, %18 : vector<38x128xf32>
    %cst_14 = arith.constant 0.707106769 : f32
    %21 = vector.broadcast %cst_14 : f32 to vector<38x128xf32>
    %22 = arith.mulf %18, %21 : vector<38x128xf32>
    %23 = math.absf %22 : vector<38x128xf32>
    %cst_15 = arith.constant 0.327591091 : f32
    %24 = vector.broadcast %cst_15 : f32 to vector<38x128xf32>
    %25 = arith.mulf %24, %23 : vector<38x128xf32>
    %cst_16 = arith.constant 1.000000e+00 : f32
    %26 = vector.broadcast %cst_16 : f32 to vector<38x128xf32>
    %27 = arith.addf %26, %25 : vector<38x128xf32>
    %cst_17 = arith.constant 1.000000e+00 : f32
    %28 = vector.broadcast %cst_17 : f32 to vector<38x128xf32>
    %29 = arith.divf %28, %27 : vector<38x128xf32>
    %cst_18 = arith.constant 1.06140542 : f32
    %30 = vector.broadcast %cst_18 : f32 to vector<38x128xf32>
    %31 = arith.mulf %30, %29 : vector<38x128xf32>
    %cst_19 = arith.constant -1.45315206 : f32
    %32 = vector.broadcast %cst_19 : f32 to vector<38x128xf32>
    %33 = arith.addf %31, %32 : vector<38x128xf32>
    %34 = arith.mulf %33, %29 : vector<38x128xf32>
    %cst_20 = arith.constant 1.42141378 : f32
    %35 = vector.broadcast %cst_20 : f32 to vector<38x128xf32>
    %36 = arith.addf %34, %35 : vector<38x128xf32>
    %37 = arith.mulf %36, %29 : vector<38x128xf32>
    %cst_21 = arith.constant -0.284496725 : f32
    %38 = vector.broadcast %cst_21 : f32 to vector<38x128xf32>
    %39 = arith.addf %37, %38 : vector<38x128xf32>
    %40 = arith.mulf %39, %29 : vector<38x128xf32>
    %cst_22 = arith.constant 0.254829586 : f32
    %41 = vector.broadcast %cst_22 : f32 to vector<38x128xf32>
    %42 = arith.addf %40, %41 : vector<38x128xf32>
    %43 = arith.mulf %42, %29 : vector<38x128xf32>
    %cst_23 = arith.constant 0.000000e+00 : f32
    %44 = vector.broadcast %cst_23 : f32 to vector<38x128xf32>
    %45 = arith.subf %44, %23 : vector<38x128xf32>
    %46 = arith.mulf %45, %23 : vector<38x128xf32>
    %47 = math.exp %46 : vector<38x128xf32>
    %48 = arith.mulf %43, %47 : vector<38x128xf32>
    %cst_24 = arith.constant 1.000000e+00 : f32
    %49 = vector.broadcast %cst_24 : f32 to vector<38x128xf32>
    %50 = arith.subf %49, %48 : vector<38x128xf32>
    %cst_25 = arith.constant 0.000000e+00 : f32
    %51 = vector.broadcast %cst_25 : f32 to vector<38x128xf32>
    %52 = arith.cmpf oge, %22, %51 : vector<38x128xf32>
    %cst_26 = arith.constant 0.000000e+00 : f32
    %53 = vector.broadcast %cst_26 : f32 to vector<38x128xf32>
    %54 = arith.subf %53, %50 : vector<38x128xf32>
    %55 = arith.select %52, %50, %54 : vector<38x128xi1>, vector<38x128xf32>
    %cst_27 = arith.constant 1.000000e+00 : f32
    %56 = vector.broadcast %cst_27 : f32 to vector<38x128xf32>
    %57 = arith.addf %56, %55 : vector<38x128xf32>
    %58 = arith.mulf %20, %57 : vector<38x128xf32>
    %59 = arith.truncf %58 : vector<38x128xf32> to vector<38x128xbf16>
    %c0_28 = arith.constant 0 : index
    %c0_29 = arith.constant 0 : index
    %c0_30 = arith.constant 0 : index
    %60 = vector.load %arg5[%c0_28, %c0_29, %c0_30] : memref<1x38x128xbf16, #tpu.memory_space<vmem>>, vector<1x38x128xbf16>
    %61 = vector.shape_cast %60 : vector<1x38x128xbf16> to vector<38x128xbf16>
    %62 = vector.shape_cast %59 : vector<38x128xbf16> to vector<1x38x128xbf16>
    tpu.vector_store %arg5[%c0_28, %c0_29, %c0_30], %62 {strides = array<i32>} : memref<1x38x128xbf16, #tpu.memory_space<vmem>>, vector<1x38x128xbf16>,
    return
  }
  func.func @transform_0(%arg0: i32, %arg1: i32) -> (i32, i32, i32) {
    %c0_i32 = arith.constant 0 : i32
    %c0_i32_0 = arith.constant 0 : i32
    %c0_i32_1 = arith.constant 0 : i32
    return %arg0, %c0_i32, %c0_i32_0 : i32, i32, i32
  }
  func.func @transform_1(%arg0: i32, %arg1: i32) -> (i32, i32, i32) {
    %c0_i32 = arith.constant 0 : i32
    %c0_i32_0 = arith.constant 0 : i32
    %c0_i32_1 = arith.constant 0 : i32
    return %c0_i32, %c0_i32_0, %arg1 : i32, i32, i32
  }
  func.func @transform_2(%arg0: i32, %arg1: i32) -> (i32, i32) {
    %c0_i32 = arith.constant 0 : i32
    %c0_i32_0 = arith.constant 0 : i32
    return %c0_i32, %arg1 : i32, i32
  }
  func.func @transform_3(%arg0: i32, %arg1: i32) -> (i32, i32, i32) {
    %c0_i32 = arith.constant 0 : i32
    %c0_i32_0 = arith.constant 0 : i32
    return %arg0, %c0_i32, %arg1 : i32, i32, i32
  }
}

</mosaic_0001>

<bundles_post_ra>
// kernel: tpu_custom_call.1
= control target key start
LH: loop header
LB: loop body
LE: loop exit
PB: predicated region body
PF: predicated region fallthrough
CT: control target
= control target key end

     0   :  { %8 = vsyncpa [#allocation3], 0  ;;  %s1535_s0 = inlined_call_operand.hbm [shape: bf16[2,40,128], index: 0, kind: input, shape index: {}]   ;;  %s1536_s1 = inlined_call_operand.hbm [shape: bf16[3,128,128], index: 1, kind: input, shape index: {}]   ;;  %s1537_s2 = inlined_call_operand.vmem [shape: f32[1,128], index: 2, kind: input, shape index: {}]   ;;  %s1538_s3 = inlined_call_operand.vmem [shape: bf16[2,38,128], index: 3, kind: output, shape index: {}]  }
   0x1   :  { %10 = vsyncpa [#allocation3 + $0x1], 0 }
   0x2   :  { %11 = vsyncpa [#allocation5], 0  ;;  %s1301_s12 = smov 0   ;;  %s1303_s13 = smov 0  }
   0x3   :  { %s1305_s14 = smov 0   ;;  %s1307_s15 = smov 0  }
   0x4   :  { %s1309_s16 = smov 0   ;;  %s1311_s17 = smov 0  }
   0x5 LB: > { %s908_s18 = sadd.s32 4294967295, %s1276_s17   ;;  %p49_p0 = scmp.ne.s32.totalorder %s1260_s13, %s1256_s12  ;;  %s1276_s17 = sphi %s1311_s17, %s17_s17   ;;  %s1272_s16 = sphi %s1309_s16, %s1546_s16   ;;  %s1268_s15 = sphi %s1307_s15, %s1545_s15   ;;  %s1264_s14 = sphi %s1305_s14, %s1544_s14   ;;  %s1260_s13 = sphi %s1303_s13, %s1543_s13   ;;  %s1256_s12 = sphi %s1301_s12, %s1542_s12  }
   0x6   : > { %p1331_p1 = scmp.eq.s32.totalorder %s908_s18, 0  ;;  %p910_p2 = scmp.ge.s32.totalorder %s1276_s17, 1 }
   0x7   : > { %p140_p3 = scmp.lt.s32.totalorder %s1276_s17, 3  ;;  %s153_s23 = sshll.u32 %s1536_s1, 4  ;;  %s154_s23 = int_to_ptr.hbm [resolvable:$true] %s153_s23 }
   0x8   : > { %p1339_p4 = por %p1331_p1, %p49_p0  ;;  %s1278_s25 = smov [#allocation4]  }
   0x9   : > { %p1346_p5 = pnand %p910_p2, %p140_p3  ;;  %s155_s26 = sshll.u32 %s1278_s25, 4  ;;  %s156_s26 = int_to_ptr.vmem [resolvable:$true] %s155_s26 }
   0xa   : > { %s1279_s27 = smov 64   ;;  %s1280_s28 = smov 4  }
   0xb   : > { %p1079_p6 = pneg %p1346_p5  ;;  %s29_s29 = sadd.s32 1, %s1272_s16 }
   0xc   : > { %p31_p8 = scmp.ge.s32.totalorder %s29_s29, 2  ;;  %s36_s30 = sadd.s32 1, %s1264_s14 }
   0xd   : > { %p1080_p7 = pnand %p1079_p6, %p1331_p1  ;;  %p43_p9 = scmp.ne.s32.totalorder %s1264_s14, %s1260_s13 }
   0xe   : > { %p44_p10 = scmp.eq.s32.totalorder %s1276_s17, 0  ;;  %s1548_s29 = smov (%p31_p8, %s29_s29), 0 }
   0xf   : > { %1082 = dma.hbm_to_vmem [thread:$0]  (!%p1080_p7), %s154_s23, 3072, %s156_s26, [#allocation5], %s1279_s27, %s1279_s27, %s1280_s28  }
  0x10   : > { %p45_p11 = por %p44_p10, %p43_p9  ;;  %p1088_p12 = scmp.lt.s32.totalorder %s1276_s17, 2 }
  0x11   : > { %s33_s4 = ssub.s32 %s1272_s16, %s1548_s29  ;;  %s175_s5 = sand.u32 1, %s1264_s14  }
  0x12   : > { %p34_p13 = scmp.eq.s32.totalorder %s33_s4, 0  ;;  %s1069_s6 = smul.u32 20, %s175_s5 }
  0x13   : > { %p1084_p0 = pnand %p1088_p12, %p45_p11  ;;  %s1070_s8 = smul.u32 20, %s1272_s16 }
  0x14   : > { %s1366_s7 = scalar_select %p34_p13, %s1264_s14, %s36_s30  }
  0x15   : > { %s179_s9 = scalar_lea.vmem [#allocation2], %s1069_s6  ;;  %s184_s18 = scalar_lea.hbm %s1535_s0, %s1070_s8 }
  0x16   : > { %s187_s10 = sshll.u32 %s179_s9, 4  ;;  %s185_s21 = sshll.u32 %s184_s18, 4  ;;  %s188_s10 = int_to_ptr.vmem [resolvable:$true] %s187_s10  ;;  %s186_s21 = int_to_ptr.hbm [resolvable:$true] %s185_s21 }
  0x17   : > { %s176_s22 = scalar_lea.sflag [#allocation3], %s175_s5  ;;  %199 = sbr.rel (%p1346_p5) target bundleno = 292 (0x124), region = 32 }
  0x18   : > { %1086 = dma.hbm_to_vmem [thread:$0]  (!%p1084_p0), %s186_s21, 320, %s188_s10, %s176_s22, %s1279_s27, %s1279_s27, %s1280_s28  }
  0x19   : > { %s201_s23 = sand.u32 (!%p1346_p5), 1, %s1260_s13  }
  0x1a   : > { %s1071_s25 = smul.u32 (!%p1346_p5), 20, %s201_s23  ;;  %s202_s26 = scalar_lea.sflag (!%p1346_p5), [#allocation3], %s201_s23 }
  0x1c   : > { %s1375_s30 = scalar_lea.vmem [#allocation2], %s1071_s25 }
  0x1d   : > { %1247 = dma.done.wait (%p1339_p4), %s202_s26, 320  }
  0x1e   : > { %1249 = vsyncadd (%p1339_p4), %s202_s26, 4294966976 }
  0x1f   : > { %1251 = dma.done.wait (%p1331_p1), [#allocation5], 3072  }
  0x20   : > { %1253 = vsyncadd (%p1331_p1), [#allocation5], 4294964224  ;;  %v1041_v0 = vld [vmem:[#allocation4 + $0x78] sm:$0xff]  ;;  %v1040_v3 = vld [vmem:[#allocation4 + $0x70] sm:$0xff]  ;;  %vm302_vm0 = vsmask.f32 7424 }
  0x21   : > { %v1033_v1 = vld [vmem:[#allocation4 + $0x38] sm:$0xff]  ;;  %377 = vmatpush.bf16.msra.mxu0 %v1041_v0  ;;  %v1032_v4 = vld [vmem:[#allocation4 + $0x30] sm:$0xff]  ;;  %1061 = vmatpush.bf16.msra.mxu3 %v1041_v0  ;;  %v1039_v6 = vld [vmem:[#allocation4 + $0x68] sm:$0xff]  ;;  %vm491_vm1 = vcmask 1046528   ;;  %p243_p1 = scmp.lt.s32.totalorder %s1268_s15, 1 }
  0x22   : > { %v1049_v2 = vld [vmem:[#allocation4 + $0xb8] sm:$0xff]  ;;  %451 = vmatpush.bf16.msra.mxu1 %v1033_v1  ;;  %v1048_v5 = vld [vmem:[#allocation4 + $0xb0] sm:$0xff]  ;;  %v1031_v7 = vld [vmem:[#allocation4 + $0x28] sm:$0xff] }
  0x23   : > { %548 = vmatpush.bf16.msra.mxu2 %v1049_v2  ;;  %v1047_v8 = vld [vmem:[#allocation4 + $0xa8] sm:$0xff]  ;;  %v1038_v9 = vld [vmem:[#allocation4 + $0x60] sm:$0xff]  ;;  %v1037_v13 = vld [vmem:[#allocation4 + $0x58] sm:$0xff]  ;;  %s1550_s15 = smov (!%p243_p1, %s1268_s15), 1 }
  0x24   : > { %v1030_v10 = vld [vmem:[#allocation4 + $0x20] sm:$0xff]  ;;  %v255_v12 = vld [vmem:[%s1375_s30 + $0x10] sm:$0xf]  ;;  %v1024_v15 = vld [vmem:[%s1375_s30] sm:$0xff]  ;;  %s1072_s24 = smul.u32 20, %s1550_s15 }
  0x25   : > { %378 = vmatpush.bf16.msra.mxu0 %v1040_v3  ;;  %1062 = vmatpush.bf16.msra.mxu3 %v1040_v3  ;;  %v1046_v11 = vld [vmem:[#allocation4 + $0xa0] sm:$0xff]  ;;  %v1029_v14 = vld [vmem:[#allocation4 + $0x18] sm:$0xff]  ;;  %v298_v17 = vunpack.c.l.b16 %v255_v12  ;;  %v1036_v19 = vld [vmem:[#allocation4 + $0x50] sm:$0xff]  ;;  %v306_v21 = vshll.u32 %v1024_v15, 16  ;;  %v304_v27 = vshrl.u32 %v1024_v15, 16  ;;  %v492_v37 = vrot.slane %v1024_v15, 1 }
  0x26   : > { %452 = vmatpush.bf16.msra.mxu1 %v1032_v4  ;;  %v1045_v16 = vld [vmem:[#allocation4 + $0x98] sm:$0xff]  ;;  %v1028_v20 = vld [vmem:[#allocation4 + $0x10] sm:$0xff]  ;;  %v1035_v25 = vld [vmem:[#allocation4 + $0x48] sm:$0xff]  ;;  %s1505_s15 = scalar_lea.vmem %s1538_s3, %s1072_s24 }
  0x27   : > { %549 = vmatpush.bf16.msra.mxu2 %v1048_v5  ;;  %v1025_v18 = vld [vmem:[%s1375_s30 + $0x8] sm:$0xff]  ;;  %v301_v23 = vpack.c.b16 %v298_v17, %v298_v17  ;;  %v1027_v26 = vld [vmem:[#allocation4 + $0x8] sm:$0xff]  ;;  %v308_v28 = vrot.slane %v306_v21, 1 }
  0x28   : > { %v1044_v22 = vld [vmem:[#allocation4 + $0x90] sm:$0xff]  ;;  %v311_v24 = vshll.u32 %v1025_v18, 16  ;;  %v1043_v29 = vld [vmem:[#allocation4 + $0x88] sm:$0xff]  ;;  %v315_v30 = vshrl.u32 %v1025_v18, 16  ;;  %v1034_v33 = vld [vmem:[#allocation4 + $0x40] sm:$0xff]  ;;  %v493_v38 = vrot.slane %v1025_v18, 1 }
  0x29   : > { %379 = vmatpush.bf16.msra.mxu0 %v1039_v6  ;;  %1063 = vmatpush.bf16.msra.mxu3 %v1039_v6  ;;  %v319_v31 = vshll.u32 %v301_v23, 16  ;;  %v1026_v34 = vld [vmem:[#allocation4] sm:$0xff]  ;;  %v309_v35 = vor.u32 %v308_v28, %v304_v27  ;;  %v323_v44 = vshrl.u32 %v301_v23, 16  ;;  %v495_v45 = vrot.slane %v301_v23, 1  ;;  %v1393_v51 = vld [vmem:[%s1537_s2] ss:$0 sm:$0xff] }
  0x2a   : > { %453 = vmatpush.bf16.msra.mxu1 %v1031_v7  ;;  %v313_v32 = vrot.slane %v311_v24, 1  ;;  %v1042_v36 = vld [vmem:[#allocation4 + $0x80] sm:$0xff]  ;;  %v494_v42 = vsel %vm491_vm1, %v492_v37, %v493_v38 }
  0x2b   : > { %550 = vmatpush.bf16.msra.mxu2 %v1047_v8  ;;  %v321_v40 = vrot.slane %v319_v31, 1  ;;  %v496_v47 = vsel %vm491_vm1, %v493_v38, %v495_v45 }
  0x2c   : > { %v317_v39 = vor.u32 %v315_v30, %v313_v32  ;;  %v314_v41 = vsel %vm302_vm0, %v309_v35, %v313_v32 }
  0x2d   : > { %380 = vmatpush.bf16.msra.mxu0 %v1038_v9  ;;  %1064 = vmatpush.bf16.msra.mxu3 %v1038_v9  ;;  %v325_v46 = vor.u32 %v323_v44, %v321_v40 }
  0x2e   : > { %454 = vmatpush.bf16.msra.mxu1 %v1030_v10  ;;  %v322_v43 = vsel %vm302_vm0, %v317_v39, %v321_v40 }
  0x2f   : > { %551 = vmatpush.bf16.msra.mxu2 %v1046_v11 }
  0x31   : > { %381 = vmatpush.bf16.msra.mxu0 %v1037_v13  ;;  %1065 = vmatpush.bf16.msra.mxu3 %v1037_v13 }
  0x32   : > { %455 = vmatpush.bf16.msra.mxu1 %v1029_v14 }
  0x33   : > { %552 = vmatpush.bf16.msra.mxu2 %v1045_v16 }
  0x35   : > { %382 = vmatpush.bf16.msra.mxu0 %v1036_v19  ;;  %1066 = vmatpush.bf16.msra.mxu3 %v1036_v19 }
  0x36   : > { %456 = vmatpush.bf16.msra.mxu1 %v1028_v20 }
  0x37   : > { %553 = vmatpush.bf16.msra.mxu2 %v1044_v22 }
  0x39   : > { %383 = vmatpush.bf16.msra.mxu0 %v1035_v25  ;;  %1067 = vmatpush.bf16.msra.mxu3 %v1035_v25 }
  0x3a   : > { %457 = vmatpush.bf16.msra.mxu1 %v1027_v26 }
  0x3b   : > { %554 = vmatpush.bf16.msra.mxu2 %v1043_v29 }
  0x3d   : > { %384 = vmatpush.bf16.msra.mxu0 %v1034_v33  ;;  %1068 = vmatpush.bf16.msra.mxu3 %v1034_v33 }
  0x3e   : > { %458 = vmatpush.bf16.msra.mxu1 %v1026_v34 }
  0x3f   : > { %555 = vmatpush.bf16.msra.mxu2 %v1042_v36 }
  0x40   : > { %385 = vmatmul.bf16.vlgmr.msra.gmra.mxu0 %v314_v41  ;;  %390 = vmatmul.bf16.vlgmr.msra.gmra.mxu3 %v322_v43 }
  0x41   : > { %459 = vmatmul.bf16.vlgmr.msra.gmra.mxu1 %v1024_v15 }
  0x42   : > { %556 = vmatmul.bf16.vlgmr.msra.gmra.mxu2 %v494_v42 }
  0x50   : > { %395 = vmatmul.bf16.gmra.mxu3 %v325_v46 }
  0x51   : > { %464 = vmatmul.bf16.gmra.mxu1 %v1025_v18 }
  0x52   : > { %561 = vmatmul.bf16.gmra.mxu2 %v496_v47 }
  0x61   : > { %469 = vmatmul.bf16.gmra.mxu1 %v301_v23 }
  0x62   : > { %566 = vmatmul.bf16.gmra.mxu2 %v495_v45 }
  0xbd   : > { %v386_v49 = vpop.f32.mrf.mxu0 }
  0xbe   : > { %v460_v48 = vpop.f32.mrf.mxu1 }
  0xbf   : > { %v461_v50 = vadd.f32 %v460_v48, %v386_v49 }
  0xc3   : > { %v391_v53 = vpop.f32.mrf.mxu3 }
  0xc5   : > { %v557_v52 = vpop.f32.mrf.mxu2  ;;  %v388_v57 = vpop.f32.mrf.mxu0 }
  0xc6   : > { %v571_v54 = vadd.f32 %v557_v52, %v461_v50  ;;  %v462_v55 = vpop.f32.mrf.mxu1 }
  0xc7   : > { %v463_v60 = vadd.f32 %v462_v55, %v388_v57 }
  0xc8   : > { %v1396_v56 = vadd.f32 %v1393_v51, %v571_v54 }
  0xca   : > { %v1399_v58 = vmul.f32 0.70710677, %v1396_v56 }
  0xcb   : > { %v393_v62 = vpop.f32.mrf.mxu3 }
  0xcc   : > { %v595_v59 = vand.u32 2147483647, %v1399_v58 }
  0xcd   : > { %v559_v61 = vpop.f32.mrf.mxu2 }
  0xce   : > { %v600_v63 = vmul.f32 0.3275911, %v595_v59  ;;  %v572_v0 = vadd.f32 %v559_v61, %v463_v60  ;;  %v465_v1 = vpop.f32.mrf.mxu1  ;;  %v730_v33 = vsub.f32 0.0, %v595_v59 }
  0xcf   : > { %v466_v4 = vadd.f32 %v465_v1, %v391_v53 }
  0xd0   : > { %v605_v2 = vadd.f32 1.0, %v600_v63  ;;  %v1403_v3 = vadd.f32 %v1393_v51, %v572_v0  ;;  %v735_v42 = vmul.f32 %v730_v33, %v595_v59 }
  0xd2   : > { %1142 = vrcp.f32 %v605_v2  ;;  %v1406_v5 = vmul.f32 0.70710677, %v1403_v3  ;;  %v621_v18 = vand.u32 2147483648, %v605_v2  ;;  %v619_v21 = vand.u32 2147483647, %v605_v2 }
  0xd3   : > { %v396_v8 = vpop.f32.mrf.mxu3  ;;  %vm615_vm3 = vweird.f32 %v605_v2  ;;  %v740_v59 = vmul.f32 1.442695, %v735_v42 }
  0xd4   : > { %v1409_v6 = vand.u32 2147483647, %v1406_v5  ;;  %v622_v29 = vor.u32 1.1754944e-38, %v621_v18  ;;  %vm620_vm5 = vcmp.eq.f32.partialorder %v619_v21, 8.507059e+37 }
  0xd5   : > { %v562_v7 = vpop.f32.mrf.mxu2 }
  0xd6   : > { %v573_v9 = vadd.f32 %v562_v7, %v466_v4  ;;  %v467_v10 = vpop.f32.mrf.mxu1  ;;  %v601_v11 = vmul.f32 0.3275911, %v1409_v6  ;;  %v731_v54 = vsub.f32 0.0, %v1409_v6 }
  0xd7   : > { %v468_v22 = vadd.f32 %v467_v10, %v393_v62 }
  0xd8   : > { %v1143_v12 = vpop.eup %1142  ;;  %v1413_v13 = vadd.f32 %v1393_v51, %v573_v9  ;;  %v606_v15 = vadd.f32 1.0, %v601_v11 }
  0xd9   : > { %v611_v14 = vmul.f32 %v1143_v12, %v605_v2  ;;  %vm616_vm2 = vweird.f32 %v1143_v12 }
  0xda   : > { %v1416_v16 = vmul.f32 0.70710677, %v1413_v13  ;;  %1144 = vrcp.f32 %v606_v15  ;;  %vm617_vm4 = vmor %vm615_vm3, %vm616_vm2  ;;  %v636_v43 = vand.u32 2147483648, %v606_v15  ;;  %v634_v46 = vand.u32 2147483647, %v606_v15 }
  0xdb   : > { %v612_v17 = vsub.f32 1.0, %v611_v14  ;;  %v398_v24 = vpop.f32.mrf.mxu3  ;;  %vm630_vm7 = vweird.f32 %v606_v15  ;;  %vm760_vm2 = vcmp.ge.f32.partialorder %v1399_v58, 0.0 }
  0xdc   : > { %v1419_v19 = vand.u32 2147483647, %v1416_v16  ;;  %v637_v60 = vor.u32 1.1754944e-38, %v636_v43  ;;  %vm635_vm9 = vcmp.eq.f32.partialorder %v634_v46, 8.507059e+37 }
  0xdd   : > { %v613_v20 = vmul.f32 %v1143_v12, %v612_v17  ;;  %v564_v23 = vpop.f32.mrf.mxu2 }
  0xde   : > { %v602_v25 = vmul.f32 0.3275911, %v1419_v19  ;;  %v470_v26 = vpop.f32.mrf.mxu1  ;;  %v574_v28 = vadd.f32 %v564_v23, %v468_v22 }
  0xdf   : > { %v614_v27 = vadd.f32 %v1143_v12, %v613_v20  ;;  %v471_v38 = vadd.f32 %v470_v26, %v396_v8  ;;  %v736_v8 = vmul.f32 %v731_v54, %v1409_v6 }
  0xe0   : > { %v1422_v30 = vadd.f32 1.0, %v602_v25  ;;  %v1145_v31 = vpop.eup %1144  ;;  %v1425_v34 = vadd.f32 %v1393_v51, %v574_v28  ;;  %v732_v28 = vsub.f32 0.0, %v1419_v19 }
  0xe1   : > { %v618_v32 = vsel %vm617_vm4, %v1143_v12, %v614_v27  ;;  %v626_v36 = vmul.f32 %v1145_v31, %v606_v15  ;;  %vm631_vm6 = vweird.f32 %v1145_v31  ;;  %v742_v23 = vmul.f32 1.442695, %v736_v8 }
  0xe2   : > { %v1427_v35 = vsel %vm620_vm5, %v622_v29, %v618_v32  ;;  %1146 = vrcp.f32 %v1422_v30  ;;  %v1432_v40 = vmul.f32 0.70710677, %v1425_v34  ;;  %vm632_vm8 = vmor %vm630_vm7, %vm631_vm6  ;;  %v651_v9 = vand.u32 2147483648, %v1422_v30 }
  0xe3   : > { %v685_v37 = vmul.f32 1.0614054, %v1427_v35  ;;  %v627_v39 = vsub.f32 1.0, %v626_v36  ;;  %v649_v12 = vand.u32 2147483647, %v1422_v30  ;;  %vm645_vm11 = vweird.f32 %v1422_v30 }
  0xe4   : > { %v1435_v47 = vand.u32 2147483647, %v1432_v40  ;;  %v652_v20 = vor.u32 1.1754944e-38, %v651_v9  ;;  %v737_v43 = vmul.f32 %v732_v28, %v1419_v19  ;;  %v585_v9 = vmul.f32 0.5, %v1396_v56 }
  0xe5   : > { %v690_v41 = vadd.f32 -1.4531521, %v685_v37  ;;  %v567_v44 = vpop.f32.mrf.mxu2  ;;  %v628_v45 = vmul.f32 %v1145_v31, %v627_v39  ;;  %vm650_vm13 = vcmp.eq.f32.partialorder %v649_v12, 8.507059e+37  ;;  %vm761_vm4 = vcmp.ge.f32.partialorder %v1406_v5, 0.0 }
  0xe6   : > { %v472_v48 = vpop.f32.mrf.mxu1  ;;  %v575_v50 = vadd.f32 %v567_v44, %v471_v38  ;;  %v603_v55 = vmul.f32 0.3275911, %v1435_v47  ;;  %v744_v19 = vmul.f32 1.442695, %v737_v43 }
  0xe7   : > { %v695_v49 = vmul.f32 %v690_v41, %v1427_v35  ;;  %v629_v53 = vadd.f32 %v1145_v31, %v628_v45 }
  0xe8   : > { %v1147_v52 = vpop.eup %1146  ;;  %v1441_v63 = vadd.f32 1.0, %v603_v55  ;;  %v1444_v0 = vadd.f32 %v1393_v51, %v575_v50 }
  0xe9   : > { %v700_v57 = vadd.f32 1.4214138, %v695_v49  ;;  %v641_v61 = vmul.f32 %v1147_v52, %v1422_v30  ;;  %v633_v62 = vsel %vm632_vm8, %v1145_v31, %v629_v53  ;;  %vm646_vm10 = vweird.f32 %v1147_v52 }
  0xea   : > { %v1447_v2 = vsel %vm635_vm9, %v637_v60, %v633_v62  ;;  %1148 = vrcp.f32 %v1441_v63  ;;  %v1455_v15 = vmul.f32 0.70710677, %v1444_v0  ;;  %vm647_vm12 = vmor %vm645_vm11, %vm646_vm10  ;;  %v666_v44 = vand.u32 2147483648, %v1441_v63 }
  0xeb   : > { %v705_v1 = vmul.f32 %v700_v57, %v1427_v35  ;;  %v642_v4 = vsub.f32 1.0, %v641_v61  ;;  %v686_v7 = vmul.f32 1.0614054, %v1447_v2  ;;  %1150 = vpow2.f32 %v740_v59 }
  0xec   : > { %v1461_v21 = vand.u32 2147483647, %v1455_v15  ;;  %1152 = vpow2.f32 %v742_v23  ;;  %v664_v46 = vand.u32 2147483647, %v1441_v63  ;;  %vm660_vm15 = vweird.f32 %v1441_v63 }
  0xed   : > { %v710_v10 = vadd.f32 -0.28449672, %v705_v1  ;;  %v643_v11 = vmul.f32 %v1147_v52, %v642_v4  ;;  %v569_v51 = vpop.f32.mrf.mxu2  ;;  %v691_v14 = vadd.f32 -1.4531521, %v686_v7  ;;  %v667_v54 = vor.u32 1.1754944e-38, %v666_v44 }
  0xee   : > { %v604_v29 = vmul.f32 0.3275911, %v1461_v21  ;;  %vm665_vm1 = vcmp.eq.f32.partialorder %v664_v46, 8.507059e+37  ;;  %v733_v60 = vsub.f32 0.0, %v1435_v47  ;;  %vm762_vm8 = vcmp.ge.f32.partialorder %v1416_v16, 0.0 }
  0xef   : > { %v715_v17 = vmul.f32 %v710_v10, %v1427_v35  ;;  %v644_v18 = vadd.f32 %v1147_v52, %v643_v11  ;;  %v696_v6 = vmul.f32 %v691_v14, %v1447_v2  ;;  %vm763_vm9 = vcmp.ge.f32.partialorder %v1432_v40, 0.0 }
  0xf0   : > { %v1149_v25 = vpop.eup %1148  ;;  %v1471_v37 = vadd.f32 1.0, %v604_v29  ;;  %v738_v51 = vmul.f32 %v733_v60, %v1435_v47  ;;  %vm764_vm10 = vcmp.ge.f32.partialorder %v1455_v15, 0.0 }
  0xf1   : > { %v720_v22 = vadd.f32 0.2548296, %v715_v17  ;;  %v648_v24 = vsel %vm647_vm12, %v1147_v52, %v644_v18  ;;  %v701_v26 = vadd.f32 1.4214138, %v696_v6  ;;  %v656_v32 = vmul.f32 %v1149_v25, %v1441_v63  ;;  %v1151_v33 = vpop.eup %1150 }
  0xf2   : > { %v1463_v27 = vsel %vm650_vm13, %v652_v20, %v648_v24  ;;  %1154 = vrcp.f32 %v1471_v37  ;;  %vm661_vm14 = vweird.f32 %v1149_v25  ;;  %v1153_v55 = vpop.eup %1152  ;;  %v679_v18 = vand.u32 2147483647, %v1471_v37 }
  0xf3   : > { %v725_v30 = vmul.f32 %v720_v22, %v1427_v35  ;;  %v687_v31 = vmul.f32 1.0614054, %v1463_v27  ;;  %v706_v36 = vmul.f32 %v701_v26, %v1447_v2  ;;  %v657_v41 = vsub.f32 1.0, %v656_v32  ;;  %vm662_vm0 = vmor %vm660_vm15, %vm661_vm14 }
  0xf4   : > { %1156 = vpow2.f32 %v744_v19  ;;  %v681_v56 = vand.u32 2147483648, %v1471_v37  ;;  %v586_v22 = vmul.f32 0.5, %v1403_v3  ;;  %vm675_vm5 = vweird.f32 %v1471_v37 }
  0xf5   : > { %v750_v38 = vmul.f32 %v1151_v33, %v725_v30  ;;  %v692_v39 = vadd.f32 -1.4531521, %v687_v31  ;;  %v711_v42 = vadd.f32 -0.28449672, %v706_v36  ;;  %v658_v45 = vmul.f32 %v1149_v25, %v657_v41 }
  0xf6   : > { %v746_v30 = vmul.f32 1.442695, %v738_v51  ;;  %vm680_vm7 = vcmp.eq.f32.partialorder %v679_v18, 8.507059e+37  ;;  %v682_v31 = vor.u32 1.1754944e-38, %v681_v56 }
  0xf7   : > { %v697_v35 = vmul.f32 %v692_v39, %v1463_v27  ;;  %v755_v48 = vsub.f32 1.0, %v750_v38  ;;  %v716_v49 = vmul.f32 %v711_v42, %v1447_v2  ;;  %v659_v52 = vadd.f32 %v1149_v25, %v658_v45 }
  0xf8   : > { %v1155_v61 = vpop.eup %1154  ;;  %v734_v38 = vsub.f32 0.0, %v1461_v21  ;;  %1158 = vpow2.f32 %v746_v30 }
  0xf9   : > { %v702_v50 = vadd.f32 1.4214138, %v697_v35  ;;  %v721_v53 = vadd.f32 0.2548296, %v716_v49  ;;  %v663_v59 = vsel %vm662_vm0, %v1149_v25, %v659_v52  ;;  %v765_v62 = vsub.f32 0.0, %v755_v48 }
  0xfa   : > { %v668_v4 = vsel %vm665_vm1, %v667_v54, %v663_v59  ;;  %v671_v8 = vmul.f32 %v1155_v61, %v1471_v37  ;;  %vm676_vm3 = vweird.f32 %v1155_v61  ;;  %v1157_v28 = vpop.eup %1156  ;;  %v739_v45 = vmul.f32 %v734_v38, %v1461_v21 }
  0xfb   : > { %v707_v57 = vmul.f32 %v702_v50, %v1463_v27  ;;  %v726_v1 = vmul.f32 %v721_v53, %v1447_v2  ;;  %v688_v7 = vmul.f32 1.0614054, %v668_v4  ;;  %v770_v17 = vsel %vm760_vm2, %v755_v48, %v765_v62  ;;  %vm677_vm6 = vmor %vm675_vm5, %vm676_vm3 }
  0xfc   : > { %v672_v14 = vsub.f32 1.0, %v671_v8  ;;  %v775_v23 = vadd.f32 1.0, %v770_v17  ;;  %v748_v19 = vmul.f32 1.442695, %v739_v45 }
  0xfd   : > { %v712_v63 = vadd.f32 -0.28449672, %v707_v57  ;;  %v751_v10 = vmul.f32 %v1153_v55, %v726_v1  ;;  %v693_v12 = vadd.f32 -1.4531521, %v688_v7  ;;  %v588_v7 = vmul.f32 0.5, %v1425_v34 }
  0xfe   : > { %v673_v20 = vmul.f32 %v1155_v61, %v672_v14  ;;  %v780_v37 = vmul.f32 %v775_v23, %v585_v9  ;;  %v1159_v53 = vpop.eup %1158  ;;  %1160 = vpow2.f32 %v748_v19 }
  0xff   : > { %v717_v11 = vmul.f32 %v712_v63, %v1463_v27  ;;  %v756_v2 = vsub.f32 1.0, %v751_v10  ;;  %v698_v58 = vmul.f32 %v693_v12, %v668_v4 }
 0x100   : > { %v674_v26 = vadd.f32 %v1155_v61, %v673_v20 }
 0x101   : > { %v722_v6 = vadd.f32 0.2548296, %v717_v11  ;;  %v766_v47 = vsub.f32 0.0, %v756_v2  ;;  %v703_v25 = vadd.f32 1.4214138, %v698_v58 }
 0x102   : > { %v678_v36 = vsel %vm677_vm6, %v1155_v61, %v674_v26 }
 0x103   : > { %v727_v24 = vmul.f32 %v722_v6, %v1463_v27  ;;  %v771_v29 = vsel %vm761_vm4, %v756_v2, %v766_v47  ;;  %v708_v3 = vmul.f32 %v703_v25, %v668_v4  ;;  %v683_v5 = vsel %vm680_vm7, %v682_v31, %v678_v36 }
 0x104   : > { %v776_v32 = vadd.f32 1.0, %v771_v29  ;;  %v689_v27 = vmul.f32 1.0614054, %v683_v5  ;;  %v1161_v16 = vpop.eup %1160  ;;  %v589_v2 = vmul.f32 0.5, %v1444_v0 }
 0x105   : > { %v752_v33 = vmul.f32 %v1157_v28, %v727_v24  ;;  %v713_v41 = vadd.f32 -0.28449672, %v708_v3 }
 0x106   : > { %v781_v39 = vmul.f32 %v776_v32, %v586_v22  ;;  %v694_v35 = vadd.f32 -1.4531521, %v689_v27 }
 0x107   : > { %v757_v43 = vsub.f32 1.0, %v752_v33  ;;  %v718_v44 = vmul.f32 %v713_v41, %v668_v4 }
 0x108   : > { %v1053_v42 = vpack.c.bf16 %v781_v39, %v780_v37  ;;  %v699_v48 = vmul.f32 %v694_v35, %v683_v5 }
 0x109   : > { %v723_v46 = vadd.f32 0.2548296, %v718_v44  ;;  %v767_v49 = vsub.f32 0.0, %v757_v43 }
 0x10a   : > { %1054 = vst [vmem:[%s1505_s15] sm:$0xff] %v1053_v42   ;;  %v704_v52 = vadd.f32 1.4214138, %v699_v48 }
 0x10b   : > { %v728_v50 = vmul.f32 %v723_v46, %v668_v4  ;;  %v772_v57 = vsel %vm762_vm8, %v757_v43, %v767_v49  ;;  %v587_v4 = vmul.f32 0.5, %v1413_v13 }
 0x10c   : > { %v709_v55 = vmul.f32 %v704_v52, %v683_v5  ;;  %v777_v21 = vadd.f32 1.0, %v772_v57 }
 0x10d   : > { %v753_v54 = vmul.f32 %v1159_v53, %v728_v50 }
 0x10e   : > { %v714_v60 = vadd.f32 -0.28449672, %v709_v55  ;;  %v782_v10 = vmul.f32 %v777_v21, %v587_v4 }
 0x10f   : > { %v758_v59 = vsub.f32 1.0, %v753_v54 }
 0x110   : > { %v719_v62 = vmul.f32 %v714_v60, %v683_v5 }
 0x111   : > { %v768_v61 = vsub.f32 0.0, %v758_v59 }
 0x112   : > { %v724_v63 = vadd.f32 0.2548296, %v719_v62 }
 0x113   : > { %v773_v1 = vsel %vm763_vm9, %v758_v59, %v768_v61 }
 0x114   : > { %v778_v8 = vadd.f32 1.0, %v773_v1  ;;  %v729_v9 = vmul.f32 %v724_v63, %v683_v5 }
 0x116   : > { %v783_v11 = vmul.f32 %v778_v8, %v588_v7  ;;  %v754_v12 = vmul.f32 %v1161_v16, %v729_v9 }
 0x118   : > { %v1058_v51 = vpack.c.bf16 %v783_v11, %v782_v10  ;;  %v759_v14 = vsub.f32 1.0, %v754_v12 }
 0x11a   : > { %1060 = vst [vmem:[%s1505_s15 + $0x8] sm:$0xff] %v1058_v51   ;;  %v769_v17 = vsub.f32 0.0, %v759_v14 }
 0x11c   : > { %v774_v40 = vsel %vm764_vm10, %v759_v14, %v769_v17 }
 0x11d   : > { %v779_v18 = vadd.f32 1.0, %v774_v40 }
 0x11f   : > { %v784_v13 = vmul.f32 %v779_v18, %v589_v2 }
 0x121   : > { %v789_v56 = vpack.c.bf16 %v784_v13, %v784_v13 }
 0x123   : > { %794 = vst [vmem:[%s1505_s15 + $0x10] sm:$0x7] %v789_v56 }
 0x124 PF: > { %s17_s17 = sadd.s32 1, %s1276_s17   ;;  %s1542_s12 = smov %s1260_s13 }
 0x125   : > { %p14_p2 = scmp.ge.s32.totalorder %s17_s17, 4   ;;  %s1543_s13 = smov %s1264_s14 }
 0x126   : > { %s1544_s14 = smov %s1366_s7  ;;  %s1545_s15 = smov %s1272_s16 }
 0x127   : > { %s1546_s16 = smov %s1548_s29  ;;  %16 = sbr.rel (!%p14_p2) target bundleno = 5 (0x5), region = 82 }
 0x12c   :  { %822 = vsyncpa [#allocation3], 1 }
 0x12d   :  { %824 = vsyncpa [#allocation3 + $0x1], 1 }
 0x12e   :  { %825 = vsyncpa [#allocation5], 1 }

</bundles_post_ra>
